<compile_context>
chip_gen: v5e
topology: v5e:2x2
jax: 0.10.0
libtpu: 0.0.40
codegen_flags: <defaults>
</compile_context>

<pallas_src>
import functools

import jax
import jax.numpy as jnp
from jax.experimental import pallas as pl
from jax.experimental.pallas import tpu as pltpu

VMEM = pl.BlockSpec(memory_space=pltpu.MemorySpace.VMEM)


# ---------------------------------------------------------------------------
# Fused Pallas kernel: whole forward pass in one call
# ---------------------------------------------------------------------------
def _fused_forward_kernel(
    a1_ref, a2_ref, pool_ref, x_ref,
    emb_w_ref, emb_b_ref,
    conv_w_ref, conv_b_ref, bn_g_ref, bn_b_ref,
    conv2_w_ref, conv2_b_ref, bn2_g_ref, bn2_b_ref,
    lin1_w_ref, lin1_b_ref, lin2_w_ref, lin2_b_ref, lin3_w_ref, lin3_b_ref,
    o_ref, *, n_layer, hidden, inv_n):
  f32 = jnp.float32

  def gcn_block(a, h_in, w, b, gamma, beta):
    # GCNConv: A_norm @ (h W) + bias                   (two MXU dots)
    xw = jnp.dot(h_in, w, preferred_element_type=f32)
    h = jnp.dot(a, xw, preferred_element_type=f32) + b
    # BatchNorm1d (training-mode batch stats, biased var, eps=1e-5).
    # Single reduction pass over the node axis: var = E[h^2] - mean^2.
    mean = jnp.sum(h, axis=0, keepdims=True) * inv_n
    ex2 = jnp.sum(h * h, axis=0, keepdims=True) * inv_n
    var = jnp.maximum(ex2 - mean * mean, 0.0)
    hn = (h - mean) * jax.lax.rsqrt(var + 1e-5)
    hn = hn * gamma + beta
    # ReLU + residual (mid_drop=0 -> identity dropout)
    return jnp.maximum(hn, 0.0) + h_in

  # x0 = emb(x)   (dropout p=0 -> identity)
  x0 = jnp.dot(x_ref[...], emb_w_ref[...], preferred_element_type=f32) + emb_b_ref[...]

  # Branch A: n_layer residual GCN blocks on the edge_index adjacency.
  a1 = a1_ref[...]            # loaded once, reused by every block
  h = x0
  for i in range(n_layer):    # static unroll; intermediates stay in VMEM/vregs
    h = gcn_block(a1, h, conv_w_ref[i], conv_b_ref[i], bn_g_ref[i], bn_b_ref[i])
  x_out_a = h

  # Branch B: one residual GCN block on the cycle_index adjacency (from x0).
  # TODO(synk): on v7x this branch is independent of branch A and could run on
  # the second TensorCore via core_map; kept single-TC here (toy sizes).
  x_out_b = gcn_block(a2_ref[...], x0, conv2_w_ref[...], conv2_b_ref[...],
                      bn2_g_ref[...], bn2_b_ref[...])

  # Per-graph mean pool + MLP head, fully fused.
  # cat(aa, bb) @ W1 written as aa @ W1[:H] + bb @ W1[H:] (no lane concat).
  pool = pool_ref[...]
  aa = jnp.dot(pool, x_out_a, preferred_element_type=f32)
  bb = jnp.dot(pool, x_out_b, preferred_element_type=f32)
  y = (jnp.dot(aa, lin1_w_ref[0:hidden, :], preferred_element_type=f32)
       + jnp.dot(bb, lin1_w_ref[hidden:2 * hidden, :], preferred_element_type=f32)
       + lin1_b_ref[...])
  y = jnp.maximum(y, 0.0)
  y = jnp.dot(y, lin2_w_ref[...], preferred_element_type=f32) + lin2_b_ref[...]
  y = jnp.maximum(y, 0.0)
  y = jnp.dot(y, lin3_w_ref[...], preferred_element_type=f32) + lin3_b_ref[...]
  o_ref[...] = y


# ---------------------------------------------------------------------------
# Glue: dense GCN normalization, pooling matrix (plain JAX, runs under jit)
# ---------------------------------------------------------------------------
def gcn_norm_dense(edge_index, edge_weight, num_nodes):
  """Dense D^{-1/2} (A + self_loops) D^{-1/2}, matching PyG gcn_norm with
  add_remaining_self_loops: an existing self-loop keeps its weight (and is not
  duplicated); nodes without a self-loop get one of weight 1."""
  src, dst = edge_index[0], edge_index[1]
  is_self = src == dst
  w_off = jnp.where(is_self, 0.0, edge_weight)            # drop explicit self-loops
  adj = jnp.zeros((num_nodes, num_nodes), jnp.float32).at[dst, src].add(w_off)
  diag = jnp.ones((num_nodes,), jnp.float32)               # fill value 1
  self_idx = jnp.where(is_self, src, num_nodes)            # OOB for non-self edges
  diag = diag.at[self_idx].set(edge_weight, mode="drop")   # keep explicit self-loop w
  idx = jnp.arange(num_nodes)
  adj = adj.at[idx, idx].set(diag)
  deg = adj.sum(axis=1)
  dinv = jnp.where(deg > 0, jax.lax.rsqrt(deg), 0.0)
  return adj * dinv[:, None] * dinv[None, :]


def mean_pool_matrix(batch, num_graphs, num_nodes):
  """P (G, N) with P[g, n] = 1/|graph g| if node n in graph g."""
  onehot = (batch[None, :] == jnp.arange(num_graphs)[:, None]).astype(jnp.float32)
  counts = onehot.sum(axis=1, keepdims=True)
  return onehot / jnp.maximum(counts, 1.0)


@functools.partial(jax.jit, static_argnames=("num_graphs",))
def forward(params, x, edge_index, cycle_index, batch, edge_attr, *, num_graphs):
  n, in_dim = x.shape
  hidden = params["emb_w"].shape[1]
  out_dim = params["lin3_w"].shape[1]
  n_layer = len(params["conv_w"])

  a1 = gcn_norm_dense(edge_index, edge_attr, n)
  a2 = gcn_norm_dense(cycle_index, jnp.ones((cycle_index.shape[1],), jnp.float32), n)
  pool = mean_pool_matrix(batch, num_graphs, n)

  row = lambda v: v.reshape(1, -1)
  conv_w = jnp.stack(params["conv_w"])                 # (L, H, H)
  conv_b = jnp.stack(params["conv_b"])[:, None, :]     # (L, 1, H)
  bn_g = jnp.stack(params["bn_g"])[:, None, :]
  bn_b = jnp.stack(params["bn_b"])[:, None, :]

  operands = (
      a1, a2, pool, x,
      params["emb_w"], row(params["emb_b"]),
      conv_w, conv_b, bn_g, bn_b,
      params["conv2_w"], row(params["conv2_b"]),
      row(params["bn2_g"]), row(params["bn2_b"]),
      params["lin1_w"], row(params["lin1_b"]),
      params["lin2_w"], row(params["lin2_b"]),
      params["lin3_w"], row(params["lin3_b"]),
  )

  mm = lambda m, k, c: 2 * m * k * c
  flops = (mm(n, in_dim, hidden)
           + (n_layer + 1) * (mm(n, hidden, hidden) + mm(n, n, hidden))
           + 2 * mm(num_graphs, n, hidden)
           + mm(num_graphs, 2 * hidden, hidden)
           + mm(num_graphs, hidden, hidden)
           + mm(num_graphs, hidden, out_dim))
  bytes_accessed = sum(int(op.size) * 4 for op in operands) + num_graphs * out_dim * 4
  cost = pl.CostEstimate(flops=flops,
                         transcendentals=(n_layer + 1) * hidden,
                         bytes_accessed=bytes_accessed)

  kernel = functools.partial(_fused_forward_kernel, n_layer=n_layer,
                             hidden=hidden, inv_n=1.0 / n)
  # TODO(synk): for realistic graph sizes (N >~ 4k on v7x) the (N, N) dense
  # adjacency must be strip-tiled over the node axis instead of whole-array VMEM.
  return pl.pallas_call(
      kernel,
      out_shape=jax.ShapeDtypeStruct((num_graphs, out_dim), jnp.float32),
      in_specs=[VMEM] * len(operands),
      out_specs=VMEM,
      cost_estimate=cost,
  )(*operands)


# ---------------------------------------------------------------------------
# Pure-JAX reference (two-pass BN stats) for a numerics cross-check
# ---------------------------------------------------------------------------
def forward_reference(params, x, edge_index, cycle_index, batch, edge_attr, num_graphs):
  n = x.shape[0]
  a1 = gcn_norm_dense(edge_index, edge_attr, n)
  a2 = gcn_norm_dense(cycle_index, jnp.ones((cycle_index.shape[1],), jnp.float32), n)
  pool = mean_pool_matrix(batch, num_graphs, n)

  def block(a, h_in, w, b, g, bt):
    h = a @ (h_in @ w) + b[None, :]
    mean = h.mean(axis=0, keepdims=True)
    var = ((h - mean) ** 2).mean(axis=0, keepdims=True)
    hn = (h - mean) / jnp.sqrt(var + 1e-5) * g[None, :] + bt[None, :]
    return jnp.maximum(hn, 0.0) + h_in

  x0 = x @ params["emb_w"] + params["emb_b"][None, :]
  h = x0
  for i in range(len(params["conv_w"])):
    h = block(a1, h, params["conv_w"][i], params["conv_b"][i],
              params["bn_g"][i], params["bn_b"][i])
  hb = block(a2, x0, params["conv2_w"], params["conv2_b"],
             params["bn2_g"], params["bn2_b"])
  out = jnp.concatenate([pool @ h, pool @ hb], axis=1)
  out = jnp.maximum(out @ params["lin1_w"] + params["lin1_b"][None, :], 0.0)
  out = jnp.maximum(out @ params["lin2_w"] + params["lin2_b"][None, :], 0.0)
  return out @ params["lin3_w"] + params["lin3_b"][None, :]


# ---------------------------------------------------------------------------
# Main
# ---------------------------------------------------------------------------
if __name__ == "__main__":
  key = jax.random.PRNGKey(0)
  N, IN_DIM, HIDDEN, OUT_DIM, G = 16, 8, 32, 4, 2
  E, C = 32, 12

  keys = jax.random.split(key, 6)
  x = jax.random.normal(keys[0], (N, IN_DIM), jnp.float32)
  edge_index = jax.random.randint(keys[1], (2, E), 0, N)
  cycle_index = jax.random.randint(keys[2], (2, C), 0, N)
  edge_attr = jax.random.uniform(keys[3], (E,), jnp.float32, minval=0.1, maxval=1.0)
  batch = jnp.concatenate(
      [jnp.zeros((N // 2,), jnp.int32), jnp.ones((N // 2,), jnp.int32)])

  def init(k, shape, scale=0.1):
    return scale * jax.random.normal(k, shape, jnp.float32)

  pk = jax.random.split(keys[4], 16)
  params = dict(
      emb_w=init(pk[0], (IN_DIM, HIDDEN)), emb_b=init(pk[1], (HIDDEN,)),
      conv_w=[init(pk[2 + i], (HIDDEN, HIDDEN)) for i in range(3)],
      conv_b=[init(pk[5 + i], (HIDDEN,)) for i in range(3)],
      bn_g=[jnp.ones((HIDDEN,), jnp.float32) for _ in range(3)],
      bn_b=[jnp.zeros((HIDDEN,), jnp.float32) for _ in range(3)],
      conv2_w=init(pk[8], (HIDDEN, HIDDEN)), conv2_b=init(pk[9], (HIDDEN,)),
      bn2_g=jnp.ones((HIDDEN,), jnp.float32),
      bn2_b=jnp.zeros((HIDDEN,), jnp.float32),
      lin1_w=init(pk[10], (2 * HIDDEN, HIDDEN)), lin1_b=init(pk[11], (HIDDEN,)),
      lin2_w=init(pk[12], (HIDDEN, HIDDEN)), lin2_b=init(pk[13], (HIDDEN,)),
      lin3_w=init(pk[14], (HIDDEN, OUT_DIM)), lin3_b=init(pk[15], (OUT_DIM,)),
  )

  out = forward(params, x, edge_index, cycle_index, batch, edge_attr, num_graphs=G)
  jax.block_until_ready(out)
  assert out.shape == (G, OUT_DIM), out.shape
  assert jnp.all(jnp.isfinite(out))

  ref = forward_reference(params, x, edge_index, cycle_index, batch, edge_attr, G)
  err = float(jnp.max(jnp.abs(out - ref)))
  assert err < 1e-3, f"mismatch vs reference: {err}"
  print("KERNEL_OK")
</pallas_src>

<mosaic_0001>
module attributes {stable_mosaic.version = 11 : i64} {
  func.func @_fused_forward_kernel(%arg0: memref<16x16xf32, #tpu.memory_space<vmem>>, %arg1: memref<16x16xf32, #tpu.memory_space<vmem>>, %arg2: memref<2x16xf32, #tpu.memory_space<vmem>>, %arg3: memref<16x8xf32, #tpu.memory_space<vmem>>, %arg4: memref<8x32xf32, #tpu.memory_space<vmem>>, %arg5: memref<1x32xf32, #tpu.memory_space<vmem>>, %arg6: memref<3x32x32xf32, #tpu.memory_space<vmem>>, %arg7: memref<3x1x32xf32, #tpu.memory_space<vmem>>, %arg8: memref<3x1x32xf32, #tpu.memory_space<vmem>>, %arg9: memref<3x1x32xf32, #tpu.memory_space<vmem>>, %arg10: memref<32x32xf32, #tpu.memory_space<vmem>>, %arg11: memref<1x32xf32, #tpu.memory_space<vmem>>, %arg12: memref<1x32xf32, #tpu.memory_space<vmem>>, %arg13: memref<1x32xf32, #tpu.memory_space<vmem>>, %arg14: memref<64x32xf32, #tpu.memory_space<vmem>>, %arg15: memref<1x32xf32, #tpu.memory_space<vmem>>, %arg16: memref<32x32xf32, #tpu.memory_space<vmem>>, %arg17: memref<1x32xf32, #tpu.memory_space<vmem>>, %arg18: memref<32x4xf32, #tpu.memory_space<vmem>>, %arg19: memref<1x4xf32, #tpu.memory_space<vmem>>, %arg20: memref<2x4xf32, #tpu.memory_space<vmem>>) attributes {dimension_semantics = [], scalar_prefetch = 0 : i64, scratch_operands = 0 : i64, tpu.core_type = #tpu.core_type<tc>} {
    %c0 = arith.constant 0 : index
    %c0_0 = arith.constant 0 : index
    %0 = vector.load %arg3[%c0, %c0_0] : memref<16x8xf32, #tpu.memory_space<vmem>>, vector<16x8xf32>
    %c0_1 = arith.constant 0 : index
    %c0_2 = arith.constant 0 : index
    %1 = vector.load %arg4[%c0_1, %c0_2] : memref<8x32xf32, #tpu.memory_space<vmem>>, vector<8x32xf32>
    %cst = arith.constant dense<0.000000e+00> : vector<16x32xf32>
    %2 = tpu.matmul %0, %1, %cst {dimension_numbers = #tpu.dot_dimension_numbers<[1], [0], [0], [1], [0, 0, 1, 1], [], []>} : vector<16x8xf32>, vector<8x32xf32>, vector<16x32xf32> -> vector<16x32xf32>
    %c0_3 = arith.constant 0 : index
    %c0_4 = arith.constant 0 : index
    %3 = vector.load %arg5[%c0_3, %c0_4] : memref<1x32xf32, #tpu.memory_space<vmem>>, vector<1x32xf32>
    %4 = vector.broadcast %3 : vector<1x32xf32> to vector<16x32xf32>
    %5 = arith.addf %2, %4 : vector<16x32xf32>
    %c0_5 = arith.constant 0 : index
    %c0_6 = arith.constant 0 : index
    %6 = vector.load %arg0[%c0_5, %c0_6] : memref<16x16xf32, #tpu.memory_space<vmem>>, vector<16x16xf32>
    %c0_7 = arith.constant 0 : index
    %c0_8 = arith.constant 0 : index
    %c0_9 = arith.constant 0 : index
    %7 = vector.load %arg6[%c0_7, %c0_8, %c0_9] : memref<3x32x32xf32, #tpu.memory_space<vmem>>, vector<1x32x32xf32>
    %8 = vector.shape_cast %7 : vector<1x32x32xf32> to vector<32x32xf32>
    %c0_10 = arith.constant 0 : index
    %c0_11 = arith.constant 0 : index
    %c0_12 = arith.constant 0 : index
    %9 = vector.load %arg7[%c0_10, %c0_11, %c0_12] : memref<3x1x32xf32, #tpu.memory_space<vmem>>, vector<1x1x32xf32>
    %10 = vector.shape_cast %9 : vector<1x1x32xf32> to vector<1x32xf32>
    %c0_13 = arith.constant 0 : index
    %c0_14 = arith.constant 0 : index
    %c0_15 = arith.constant 0 : index
    %11 = vector.load %arg8[%c0_13, %c0_14, %c0_15] : memref<3x1x32xf32, #tpu.memory_space<vmem>>, vector<1x1x32xf32>
    %12 = vector.shape_cast %11 : vector<1x1x32xf32> to vector<1x32xf32>
    %c0_16 = arith.constant 0 : index
    %c0_17 = arith.constant 0 : index
    %c0_18 = arith.constant 0 : index
    %13 = vector.load %arg9[%c0_16, %c0_17, %c0_18] : memref<3x1x32xf32, #tpu.memory_space<vmem>>, vector<1x1x32xf32>
    %14 = vector.shape_cast %13 : vector<1x1x32xf32> to vector<1x32xf32>
    %cst_19 = arith.constant dense<0.000000e+00> : vector<16x32xf32>
    %15 = tpu.matmul %5, %8, %cst_19 {dimension_numbers = #tpu.dot_dimension_numbers<[1], [0], [0], [1], [0, 0, 1, 1], [], []>} : vector<16x32xf32>, vector<32x32xf32>, vector<16x32xf32> -> vector<16x32xf32>
    %cst_20 = arith.constant dense<0.000000e+00> : vector<16x32xf32>
    %16 = tpu.matmul %6, %15, %cst_20 {dimension_numbers = #tpu.dot_dimension_numbers<[1], [0], [0], [1], [0, 0, 1, 1], [], []>} : vector<16x16xf32>, vector<16x32xf32>, vector<16x32xf32> -> vector<16x32xf32>
    %17 = vector.broadcast %10 : vector<1x32xf32> to vector<16x32xf32>
    %18 = arith.addf %16, %17 : vector<16x32xf32>
    %cst_21 = arith.constant dense<0.000000e+00> : vector<32xf32>
    %19 = vector.multi_reduction <add>, %18, %cst_21 [0] : vector<16x32xf32> to vector<32xf32>
    %20 = vector.shape_cast %19 : vector<32xf32> to vector<1x32xf32>
    %cst_22 = arith.constant 6.250000e-02 : f32
    %21 = vector.broadcast %cst_22 : f32 to vector<1x32xf32>
    %22 = arith.mulf %20, %21 : vector<1x32xf32>
    %23 = arith.mulf %18, %18 : vector<16x32xf32>
    %cst_23 = arith.constant dense<0.000000e+00> : vector<32xf32>
    %24 = vector.multi_reduction <add>, %23, %cst_23 [0] : vector<16x32xf32> to vector<32xf32>
    %25 = vector.shape_cast %24 : vector<32xf32> to vector<1x32xf32>
    %cst_24 = arith.constant 6.250000e-02 : f32
    %26 = vector.broadcast %cst_24 : f32 to vector<1x32xf32>
    %27 = arith.mulf %25, %26 : vector<1x32xf32>
    %28 = arith.mulf %22, %22 : vector<1x32xf32>
    %29 = arith.subf %27, %28 : vector<1x32xf32>
    %cst_25 = arith.constant 0.000000e+00 : f32
    %30 = vector.broadcast %cst_25 : f32 to vector<1x32xf32>
    %31 = arith.maximumf %29, %30 : vector<1x32xf32>
    %32 = vector.broadcast %22 : vector<1x32xf32> to vector<16x32xf32>
    %33 = arith.subf %18, %32 : vector<16x32xf32>
    %cst_26 = arith.constant 9.99999974E-6 : f32
    %34 = vector.broadcast %cst_26 : f32 to vector<1x32xf32>
    %35 = arith.addf %31, %34 : vector<1x32xf32>
    %36 = math.rsqrt %35 : vector<1x32xf32>
    %37 = vector.broadcast %36 : vector<1x32xf32> to vector<16x32xf32>
    %38 = arith.mulf %33, %37 : vector<16x32xf32>
    %39 = vector.broadcast %12 : vector<1x32xf32> to vector<16x32xf32>
    %40 = arith.mulf %38, %39 : vector<16x32xf32>
    %41 = vector.broadcast %14 : vector<1x32xf32> to vector<16x32xf32>
    %42 = arith.addf %40, %41 : vector<16x32xf32>
    %cst_27 = arith.constant 0.000000e+00 : f32
    %43 = vector.broadcast %cst_27 : f32 to vector<16x32xf32>
    %44 = arith.maximumf %42, %43 : vector<16x32xf32>
    %45 = arith.addf %44, %5 : vector<16x32xf32>
    %c1 = arith.constant 1 : index
    %c0_28 = arith.constant 0 : index
    %c0_29 = arith.constant 0 : index
    %46 = vector.load %arg6[%c1, %c0_28, %c0_29] : memref<3x32x32xf32, #tpu.memory_space<vmem>>, vector<1x32x32xf32>
    %47 = vector.shape_cast %46 : vector<1x32x32xf32> to vector<32x32xf32>
    %c1_30 = arith.constant 1 : index
    %c0_31 = arith.constant 0 : index
    %c0_32 = arith.constant 0 : index
    %48 = vector.load %arg7[%c1_30, %c0_31, %c0_32] : memref<3x1x32xf32, #tpu.memory_space<vmem>>, vector<1x1x32xf32>
    %49 = vector.shape_cast %48 : vector<1x1x32xf32> to vector<1x32xf32>
    %c1_33 = arith.constant 1 : index
    %c0_34 = arith.constant 0 : index
    %c0_35 = arith.constant 0 : index
    %50 = vector.load %arg8[%c1_33, %c0_34, %c0_35] : memref<3x1x32xf32, #tpu.memory_space<vmem>>, vector<1x1x32xf32>
    %51 = vector.shape_cast %50 : vector<1x1x32xf32> to vector<1x32xf32>
    %c1_36 = arith.constant 1 : index
    %c0_37 = arith.constant 0 : index
    %c0_38 = arith.constant 0 : index
    %52 = vector.load %arg9[%c1_36, %c0_37, %c0_38] : memref<3x1x32xf32, #tpu.memory_space<vmem>>, vector<1x1x32xf32>
    %53 = vector.shape_cast %52 : vector<1x1x32xf32> to vector<1x32xf32>
    %cst_39 = arith.constant dense<0.000000e+00> : vector<16x32xf32>
    %54 = tpu.matmul %45, %47, %cst_39 {dimension_numbers = #tpu.dot_dimension_numbers<[1], [0], [0], [1], [0, 0, 1, 1], [], []>} : vector<16x32xf32>, vector<32x32xf32>, vector<16x32xf32> -> vector<16x32xf32>
    %cst_40 = arith.constant dense<0.000000e+00> : vector<16x32xf32>
    %55 = tpu.matmul %6, %54, %cst_40 {dimension_numbers = #tpu.dot_dimension_numbers<[1], [0], [0], [1], [0, 0, 1, 1], [], []>} : vector<16x16xf32>, vector<16x32xf32>, vector<16x32xf32> -> vector<16x32xf32>
    %56 = vector.broadcast %49 : vector<1x32xf32> to vector<16x32xf32>
    %57 = arith.addf %55, %56 : vector<16x32xf32>
    %cst_41 = arith.constant dense<0.000000e+00> : vector<32xf32>
    %58 = vector.multi_reduction <add>, %57, %cst_41 [0] : vector<16x32xf32> to vector<32xf32>
    %59 = vector.shape_cast %58 : vector<32xf32> to vector<1x32xf32>
    %cst_42 = arith.constant 6.250000e-02 : f32
    %60 = vector.broadcast %cst_42 : f32 to vector<1x32xf32>
    %61 = arith.mulf %59, %60 : vector<1x32xf32>
    %62 = arith.mulf %57, %57 : vector<16x32xf32>
    %cst_43 = arith.constant dense<0.000000e+00> : vector<32xf32>
    %63 = vector.multi_reduction <add>, %62, %cst_43 [0] : vector<16x32xf32> to vector<32xf32>
    %64 = vector.shape_cast %63 : vector<32xf32> to vector<1x32xf32>
    %cst_44 = arith.constant 6.250000e-02 : f32
    %65 = vector.broadcast %cst_44 : f32 to vector<1x32xf32>
    %66 = arith.mulf %64, %65 : vector<1x32xf32>
    %67 = arith.mulf %61, %61 : vector<1x32xf32>
    %68 = arith.subf %66, %67 : vector<1x32xf32>
    %cst_45 = arith.constant 0.000000e+00 : f32
    %69 = vector.broadcast %cst_45 : f32 to vector<1x32xf32>
    %70 = arith.maximumf %68, %69 : vector<1x32xf32>
    %71 = vector.broadcast %61 : vector<1x32xf32> to vector<16x32xf32>
    %72 = arith.subf %57, %71 : vector<16x32xf32>
    %cst_46 = arith.constant 9.99999974E-6 : f32
    %73 = vector.broadcast %cst_46 : f32 to vector<1x32xf32>
    %74 = arith.addf %70, %73 : vector<1x32xf32>
    %75 = math.rsqrt %74 : vector<1x32xf32>
    %76 = vector.broadcast %75 : vector<1x32xf32> to vector<16x32xf32>
    %77 = arith.mulf %72, %76 : vector<16x32xf32>
    %78 = vector.broadcast %51 : vector<1x32xf32> to vector<16x32xf32>
    %79 = arith.mulf %77, %78 : vector<16x32xf32>
    %80 = vector.broadcast %53 : vector<1x32xf32> to vector<16x32xf32>
    %81 = arith.addf %79, %80 : vector<16x32xf32>
    %cst_47 = arith.constant 0.000000e+00 : f32
    %82 = vector.broadcast %cst_47 : f32 to vector<16x32xf32>
    %83 = arith.maximumf %81, %82 : vector<16x32xf32>
    %84 = arith.addf %83, %45 : vector<16x32xf32>
    %c2 = arith.constant 2 : index
    %c0_48 = arith.constant 0 : index
    %c0_49 = arith.constant 0 : index
    %85 = vector.load %arg6[%c2, %c0_48, %c0_49] : memref<3x32x32xf32, #tpu.memory_space<vmem>>, vector<1x32x32xf32>
    %86 = vector.shape_cast %85 : vector<1x32x32xf32> to vector<32x32xf32>
    %c2_50 = arith.constant 2 : index
    %c0_51 = arith.constant 0 : index
    %c0_52 = arith.constant 0 : index
    %87 = vector.load %arg7[%c2_50, %c0_51, %c0_52] : memref<3x1x32xf32, #tpu.memory_space<vmem>>, vector<1x1x32xf32>
    %88 = vector.shape_cast %87 : vector<1x1x32xf32> to vector<1x32xf32>
    %c2_53 = arith.constant 2 : index
    %c0_54 = arith.constant 0 : index
    %c0_55 = arith.constant 0 : index
    %89 = vector.load %arg8[%c2_53, %c0_54, %c0_55] : memref<3x1x32xf32, #tpu.memory_space<vmem>>, vector<1x1x32xf32>
    %90 = vector.shape_cast %89 : vector<1x1x32xf32> to vector<1x32xf32>
    %c2_56 = arith.constant 2 : index
    %c0_57 = arith.constant 0 : index
    %c0_58 = arith.constant 0 : index
    %91 = vector.load %arg9[%c2_56, %c0_57, %c0_58] : memref<3x1x32xf32, #tpu.memory_space<vmem>>, vector<1x1x32xf32>
    %92 = vector.shape_cast %91 : vector<1x1x32xf32> to vector<1x32xf32>
    %cst_59 = arith.constant dense<0.000000e+00> : vector<16x32xf32>
    %93 = tpu.matmul %84, %86, %cst_59 {dimension_numbers = #tpu.dot_dimension_numbers<[1], [0], [0], [1], [0, 0, 1, 1], [], []>} : vector<16x32xf32>, vector<32x32xf32>, vector<16x32xf32> -> vector<16x32xf32>
    %cst_60 = arith.constant dense<0.000000e+00> : vector<16x32xf32>
    %94 = tpu.matmul %6, %93, %cst_60 {dimension_numbers = #tpu.dot_dimension_numbers<[1], [0], [0], [1], [0, 0, 1, 1], [], []>} : vector<16x16xf32>, vector<16x32xf32>, vector<16x32xf32> -> vector<16x32xf32>
    %95 = vector.broadcast %88 : vector<1x32xf32> to vector<16x32xf32>
    %96 = arith.addf %94, %95 : vector<16x32xf32>
    %cst_61 = arith.constant dense<0.000000e+00> : vector<32xf32>
    %97 = vector.multi_reduction <add>, %96, %cst_61 [0] : vector<16x32xf32> to vector<32xf32>
    %98 = vector.shape_cast %97 : vector<32xf32> to vector<1x32xf32>
    %cst_62 = arith.constant 6.250000e-02 : f32
    %99 = vector.broadcast %cst_62 : f32 to vector<1x32xf32>
    %100 = arith.mulf %98, %99 : vector<1x32xf32>
    %101 = arith.mulf %96, %96 : vector<16x32xf32>
    %cst_63 = arith.constant dense<0.000000e+00> : vector<32xf32>
    %102 = vector.multi_reduction <add>, %101, %cst_63 [0] : vector<16x32xf32> to vector<32xf32>
    %103 = vector.shape_cast %102 : vector<32xf32> to vector<1x32xf32>
    %cst_64 = arith.constant 6.250000e-02 : f32
    %104 = vector.broadcast %cst_64 : f32 to vector<1x32xf32>
    %105 = arith.mulf %103, %104 : vector<1x32xf32>
    %106 = arith.mulf %100, %100 : vector<1x32xf32>
    %107 = arith.subf %105, %106 : vector<1x32xf32>
    %cst_65 = arith.constant 0.000000e+00 : f32
    %108 = vector.broadcast %cst_65 : f32 to vector<1x32xf32>
    %109 = arith.maximumf %107, %108 : vector<1x32xf32>
    %110 = vector.broadcast %100 : vector<1x32xf32> to vector<16x32xf32>
    %111 = arith.subf %96, %110 : vector<16x32xf32>
    %cst_66 = arith.constant 9.99999974E-6 : f32
    %112 = vector.broadcast %cst_66 : f32 to vector<1x32xf32>
    %113 = arith.addf %109, %112 : vector<1x32xf32>
    %114 = math.rsqrt %113 : vector<1x32xf32>
    %115 = vector.broadcast %114 : vector<1x32xf32> to vector<16x32xf32>
    %116 = arith.mulf %111, %115 : vector<16x32xf32>
    %117 = vector.broadcast %90 : vector<1x32xf32> to vector<16x32xf32>
    %118 = arith.mulf %116, %117 : vector<16x32xf32>
    %119 = vector.broadcast %92 : vector<1x32xf32> to vector<16x32xf32>
    %120 = arith.addf %118, %119 : vector<16x32xf32>
    %cst_67 = arith.constant 0.000000e+00 : f32
    %121 = vector.broadcast %cst_67 : f32 to vector<16x32xf32>
    %122 = arith.maximumf %120, %121 : vector<16x32xf32>
    %123 = arith.addf %122, %84 : vector<16x32xf32>
    %c0_68 = arith.constant 0 : index
    %c0_69 = arith.constant 0 : index
    %124 = vector.load %arg1[%c0_68, %c0_69] : memref<16x16xf32, #tpu.memory_space<vmem>>, vector<16x16xf32>
    %c0_70 = arith.constant 0 : index
    %c0_71 = arith.constant 0 : index
    %125 = vector.load %arg10[%c0_70, %c0_71] : memref<32x32xf32, #tpu.memory_space<vmem>>, vector<32x32xf32>
    %c0_72 = arith.constant 0 : index
    %c0_73 = arith.constant 0 : index
    %126 = vector.load %arg11[%c0_72, %c0_73] : memref<1x32xf32, #tpu.memory_space<vmem>>, vector<1x32xf32>
    %c0_74 = arith.constant 0 : index
    %c0_75 = arith.constant 0 : index
    %127 = vector.load %arg12[%c0_74, %c0_75] : memref<1x32xf32, #tpu.memory_space<vmem>>, vector<1x32xf32>
    %c0_76 = arith.constant 0 : index
    %c0_77 = arith.constant 0 : index
    %128 = vector.load %arg13[%c0_76, %c0_77] : memref<1x32xf32, #tpu.memory_space<vmem>>, vector<1x32xf32>
    %cst_78 = arith.constant dense<0.000000e+00> : vector<16x32xf32>
    %129 = tpu.matmul %5, %125, %cst_78 {dimension_numbers = #tpu.dot_dimension_numbers<[1], [0], [0], [1], [0, 0, 1, 1], [], []>} : vector<16x32xf32>, vector<32x32xf32>, vector<16x32xf32> -> vector<16x32xf32>
    %cst_79 = arith.constant dense<0.000000e+00> : vector<16x32xf32>
    %130 = tpu.matmul %124, %129, %cst_79 {dimension_numbers = #tpu.dot_dimension_numbers<[1], [0], [0], [1], [0, 0, 1, 1], [], []>} : vector<16x16xf32>, vector<16x32xf32>, vector<16x32xf32> -> vector<16x32xf32>
    %131 = vector.broadcast %126 : vector<1x32xf32> to vector<16x32xf32>
    %132 = arith.addf %130, %131 : vector<16x32xf32>
    %cst_80 = arith.constant dense<0.000000e+00> : vector<32xf32>
    %133 = vector.multi_reduction <add>, %132, %cst_80 [0] : vector<16x32xf32> to vector<32xf32>
    %134 = vector.shape_cast %133 : vector<32xf32> to vector<1x32xf32>
    %cst_81 = arith.constant 6.250000e-02 : f32
    %135 = vector.broadcast %cst_81 : f32 to vector<1x32xf32>
    %136 = arith.mulf %134, %135 : vector<1x32xf32>
    %137 = arith.mulf %132, %132 : vector<16x32xf32>
    %cst_82 = arith.constant dense<0.000000e+00> : vector<32xf32>
    %138 = vector.multi_reduction <add>, %137, %cst_82 [0] : vector<16x32xf32> to vector<32xf32>
    %139 = vector.shape_cast %138 : vector<32xf32> to vector<1x32xf32>
    %cst_83 = arith.constant 6.250000e-02 : f32
    %140 = vector.broadcast %cst_83 : f32 to vector<1x32xf32>
    %141 = arith.mulf %139, %140 : vector<1x32xf32>
    %142 = arith.mulf %136, %136 : vector<1x32xf32>
    %143 = arith.subf %141, %142 : vector<1x32xf32>
    %cst_84 = arith.constant 0.000000e+00 : f32
    %144 = vector.broadcast %cst_84 : f32 to vector<1x32xf32>
    %145 = arith.maximumf %143, %144 : vector<1x32xf32>
    %146 = vector.broadcast %136 : vector<1x32xf32> to vector<16x32xf32>
    %147 = arith.subf %132, %146 : vector<16x32xf32>
    %cst_85 = arith.constant 9.99999974E-6 : f32
    %148 = vector.broadcast %cst_85 : f32 to vector<1x32xf32>
    %149 = arith.addf %145, %148 : vector<1x32xf32>
    %150 = math.rsqrt %149 : vector<1x32xf32>
    %151 = vector.broadcast %150 : vector<1x32xf32> to vector<16x32xf32>
    %152 = arith.mulf %147, %151 : vector<16x32xf32>
    %153 = vector.broadcast %127 : vector<1x32xf32> to vector<16x32xf32>
    %154 = arith.mulf %152, %153 : vector<16x32xf32>
    %155 = vector.broadcast %128 : vector<1x32xf32> to vector<16x32xf32>
    %156 = arith.addf %154, %155 : vector<16x32xf32>
    %cst_86 = arith.constant 0.000000e+00 : f32
    %157 = vector.broadcast %cst_86 : f32 to vector<16x32xf32>
    %158 = arith.maximumf %156, %157 : vector<16x32xf32>
    %159 = arith.addf %158, %5 : vector<16x32xf32>
    %c0_87 = arith.constant 0 : index
    %c0_88 = arith.constant 0 : index
    %160 = vector.load %arg2[%c0_87, %c0_88] : memref<2x16xf32, #tpu.memory_space<vmem>>, vector<2x16xf32>
    %cst_89 = arith.constant dense<0.000000e+00> : vector<2x32xf32>
    %161 = tpu.matmul %160, %123, %cst_89 {dimension_numbers = #tpu.dot_dimension_numbers<[1], [0], [0], [1], [0, 0, 1, 1], [], []>} : vector<2x16xf32>, vector<16x32xf32>, vector<2x32xf32> -> vector<2x32xf32>
    %cst_90 = arith.constant dense<0.000000e+00> : vector<2x32xf32>
    %162 = tpu.matmul %160, %159, %cst_90 {dimension_numbers = #tpu.dot_dimension_numbers<[1], [0], [0], [1], [0, 0, 1, 1], [], []>} : vector<2x16xf32>, vector<16x32xf32>, vector<2x32xf32> -> vector<2x32xf32>
    %c0_91 = arith.constant 0 : index
    %c0_92 = arith.constant 0 : index
    %163 = vector.load %arg14[%c0_91, %c0_92] : memref<64x32xf32, #tpu.memory_space<vmem>>, vector<32x32xf32>
    %cst_93 = arith.constant dense<0.000000e+00> : vector<2x32xf32>
    %164 = tpu.matmul %161, %163, %cst_93 {dimension_numbers = #tpu.dot_dimension_numbers<[1], [0], [0], [1], [0, 0, 1, 1], [], []>} : vector<2x32xf32>, vector<32x32xf32>, vector<2x32xf32> -> vector<2x32xf32>
    %c32 = arith.constant 32 : index
    %c0_94 = arith.constant 0 : index
    %165 = vector.load %arg14[%c32, %c0_94] : memref<64x32xf32, #tpu.memory_space<vmem>>, vector<32x32xf32>
    %cst_95 = arith.constant dense<0.000000e+00> : vector<2x32xf32>
    %166 = tpu.matmul %162, %165, %cst_95 {dimension_numbers = #tpu.dot_dimension_numbers<[1], [0], [0], [1], [0, 0, 1, 1], [], []>} : vector<2x32xf32>, vector<32x32xf32>, vector<2x32xf32> -> vector<2x32xf32>
    %167 = arith.addf %164, %166 : vector<2x32xf32>
    %c0_96 = arith.constant 0 : index
    %c0_97 = arith.constant 0 : index
    %168 = vector.load %arg15[%c0_96, %c0_97] : memref<1x32xf32, #tpu.memory_space<vmem>>, vector<1x32xf32>
    %169 = vector.broadcast %168 : vector<1x32xf32> to vector<2x32xf32>
    %170 = arith.addf %167, %169 : vector<2x32xf32>
    %cst_98 = arith.constant 0.000000e+00 : f32
    %171 = vector.broadcast %cst_98 : f32 to vector<2x32xf32>
    %172 = arith.maximumf %170, %171 : vector<2x32xf32>
    %c0_99 = arith.constant 0 : index
    %c0_100 = arith.constant 0 : index
    %173 = vector.load %arg16[%c0_99, %c0_100] : memref<32x32xf32, #tpu.memory_space<vmem>>, vector<32x32xf32>
    %cst_101 = arith.constant dense<0.000000e+00> : vector<2x32xf32>
    %174 = tpu.matmul %172, %173, %cst_101 {dimension_numbers = #tpu.dot_dimension_numbers<[1], [0], [0], [1], [0, 0, 1, 1], [], []>} : vector<2x32xf32>, vector<32x32xf32>, vector<2x32xf32> -> vector<2x32xf32>
    %c0_102 = arith.constant 0 : index
    %c0_103 = arith.constant 0 : index
    %175 = vector.load %arg17[%c0_102, %c0_103] : memref<1x32xf32, #tpu.memory_space<vmem>>, vector<1x32xf32>
    %176 = vector.broadcast %175 : vector<1x32xf32> to vector<2x32xf32>
    %177 = arith.addf %174, %176 : vector<2x32xf32>
    %cst_104 = arith.constant 0.000000e+00 : f32
    %178 = vector.broadcast %cst_104 : f32 to vector<2x32xf32>
    %179 = arith.maximumf %177, %178 : vector<2x32xf32>
    %c0_105 = arith.constant 0 : index
    %c0_106 = arith.constant 0 : index
    %180 = vector.load %arg18[%c0_105, %c0_106] : memref<32x4xf32, #tpu.memory_space<vmem>>, vector<32x4xf32>
    %cst_107 = arith.constant dense<0.000000e+00> : vector<2x4xf32>
    %181 = tpu.matmul %179, %180, %cst_107 {dimension_numbers = #tpu.dot_dimension_numbers<[1], [0], [0], [1], [0, 0, 1, 1], [], []>} : vector<2x32xf32>, vector<32x4xf32>, vector<2x4xf32> -> vector<2x4xf32>
    %c0_108 = arith.constant 0 : index
    %c0_109 = arith.constant 0 : index
    %182 = vector.load %arg19[%c0_108, %c0_109] : memref<1x4xf32, #tpu.memory_space<vmem>>, vector<1x4xf32>
    %183 = vector.broadcast %182 : vector<1x4xf32> to vector<2x4xf32>
    %184 = arith.addf %181, %183 : vector<2x4xf32>
    %c0_110 = arith.constant 0 : index
    %c0_111 = arith.constant 0 : index
    %185 = vector.load %arg20[%c0_110, %c0_111] : memref<2x4xf32, #tpu.memory_space<vmem>>, vector<2x4xf32>
    tpu.vector_store %arg20[%c0_110, %c0_111], %184 {strides = array<i32>} : memref<2x4xf32, #tpu.memory_space<vmem>>, vector<2x4xf32>,
    return
  }
}

</mosaic_0001>

<bundles_post_ra>
// kernel: forward.1
= control target key start
LH: loop header
LB: loop body
LE: loop exit
PB: predicated region body
PF: predicated region fallthrough
CT: control target
= control target key end

     0   :  { %s1214_s0 = inlined_call_operand.vmem [shape: f32[16,16], index: 0, kind: input, shape index: {}]   ;;  %s1215_s1 = inlined_call_operand.vmem [shape: f32[16,16], index: 1, kind: input, shape index: {}]   ;;  %s1216_s2 = inlined_call_operand.vmem [shape: f32[2,16], index: 2, kind: input, shape index: {}]   ;;  %s1217_s3 = inlined_call_operand.vmem [shape: f32[16,8], index: 3, kind: input, shape index: {}]   ;;  %s1218_s4 = inlined_call_operand.vmem [shape: f32[8,32], index: 4, kind: input, shape index: {}]   ;;  %s1219_s5 = inlined_call_operand.vmem [shape: f32[1,32], index: 5, kind: input, shape index: {}]   ;;  %s1220_s6 = inlined_call_operand.vmem [shape: f32[3,32,32], index: 6, kind: input, shape index: {}]   ;;  %s1221_s7 = inlined_call_operand.vmem [shape: f32[3,1,32], index: 7, kind: input, shape index: {}]   ;;  %s1222_s8 = inlined_call_operand.vmem [shape: f32[3,1,32], index: 8, kind: input, shape index: {}]   ;;  %s1223_s9 = inlined_call_operand.vmem [shape: f32[3,1,32], index: 9, kind: input, shape index: {}]   ;;  %s1224_s10 = inlined_call_operand.vmem [shape: f32[32,32], index: 10, kind: input, shape index: {}]   ;;  %s1225_s11 = inlined_call_operand.vmem [shape: f32[1,32], index: 11, kind: input, shape index: {}]   ;;  %s1226_s12 = inlined_call_operand.vmem [shape: f32[1,32], index: 12, kind: input, shape index: {}]   ;;  %s1227_s13 = inlined_call_operand.vmem [shape: f32[1,32], index: 13, kind: input, shape index: {}]   ;;  %s1228_s14 = inlined_call_operand.vmem [shape: f32[64,32], index: 14, kind: input, shape index: {}]   ;;  %s1229_s15 = inlined_call_operand.vmem [shape: f32[1,32], index: 15, kind: input, shape index: {}]   ;;  %s1230_s16 = inlined_call_operand.vmem [shape: f32[32,32], index: 16, kind: input, shape index: {}]   ;;  %s1231_s17 = inlined_call_operand.vmem [shape: f32[1,32], index: 17, kind: input, shape index: {}]   ;;  %s1232_s18 = inlined_call_operand.vmem [shape: f32[32,4], index: 18, kind: input, shape index: {}]   ;;  %s1233_s19 = inlined_call_operand.vmem [shape: f32[1,4], index: 19, kind: input, shape index: {}]   ;;  %s1234_s20 = inlined_call_operand.hbm [shape: f32[2,4], index: 20, kind: output, shape index: {}]  }
   0x1   :  { %1238 = sst [smem:[#allocation5_spill]] %s1214_s0 }
   0x2   :  { %1239 = sst [smem:[#allocation6_spill]] %s1215_s1 }
   0x3   :  { %1240 = sst [smem:[#allocation7_spill]] %s1216_s2 }
   0x4   :  { %1241 = sst [smem:[#allocation8_spill]] %s1217_s3 }
   0x5   :  { %1242 = sst [smem:[#allocation9_spill]] %s1218_s4 }
   0x6   :  { %1243 = sst [smem:[#allocation10_spill]] %s1229_s15 }
   0x7   :  { %s1244_s23 = sld [smem:[#allocation9_spill]]  ;;  %vm73_vm0 = vcmask 64512   ;;  %v108_v2 = vld [vmem:[%s1220_s6 + $0x18] sm:$0xff]  ;;  %v107_v3 = vld [vmem:[%s1220_s6 + $0x10] sm:$0xff] }
   0x8   :  { %s1245_s15 = sld [smem:[#allocation8_spill]]  ;;  %131 = vmatpush.msra.mxu1 %v108_v2 }
   0xa   :  { %132 = vmatpush.msra.mxu1 %v107_v3 }
   0xd   :  { %v68_v0 = vld [vmem:[%s1244_s23] sm:$0xff] }
   0xe   :  { %v66_v1 = vld [vmem:[%s1245_s15] sm:$0xff]  ;;  %95 = vmatpush.msra.mxu0 %v68_v0  ;;  %v67_v4 = vld [vmem:[%s1245_s15 + $0x8] sm:$0xff] }
   0xf   :  { %772 = vmatmul.msk.f32.vlgmr.msra.gmra.mxu0 %vm73_vm0, %v66_v1 }
  0x10   :  { %25 = vsyncpa [#allocation3], 0  ;;  %v106_v5 = vld [vmem:[%s1220_s6 + $0x8] sm:$0xff]  ;;  %v105_v6 = vld [vmem:[%s1220_s6] sm:$0xff]  ;;  %vm112_vm1 = vcmask 261120   ;;  %s1246_s24 = sld [smem:[#allocation5_spill]] }
  0x11   :  { %133 = vmatpush.msra.mxu1 %v106_v5  ;;  %v811_v7 = vld [vmem:[%s1219_s5] ss:$0 sm:$0xff]  ;;  %vm145_vm2 = vcmask 130048   ;;  %v781_v38 = vld [vmem:[%s1220_s6 + $0x38] sm:$0xff]  ;;  %v780_v39 = vld [vmem:[%s1220_s6 + $0x30] sm:$0xff]  ;;  %s1247_s29 = sld [smem:[#allocation6_spill]] }
  0x12   :  { %v812_v17 = vld [vmem:[%s1221_s7] ss:$0 sm:$0xff]  ;;  %258 = vmatpush.msra.mxu3 %v781_v38  ;;  %v779_v42 = vld [vmem:[%s1220_s6 + $0x28] sm:$0xff]  ;;  %v474_v51 = vld [vmem:[%s1224_s10 + $0x18] sm:$0xff]  ;;  %s1248_s1 = sld [smem:[#allocation7_spill]]  ;;  %vm754_vm15 = vcmask 25600  }
  0x13   :  { %134 = vmatpush.msra.mxu1 %v105_v6  ;;  %v778_v45 = vld [vmem:[%s1220_s6 + $0x20] sm:$0xff]  ;;  %v473_v52 = vld [vmem:[%s1224_s10 + $0x10] sm:$0xff]  ;;  %v472_v54 = vld [vmem:[%s1224_s10 + $0x8] sm:$0xff]  ;;  %s1249_s26 = sld [smem:[#allocation10_spill]] }
  0x14   :  { %259 = vmatpush.msra.mxu3 %v780_v39  ;;  %v471_v56 = vld [vmem:[%s1224_s10] sm:$0xff] }
  0x15   :  { %v813_v63 = vld [vmem:[%s1222_s8] ss:$0 sm:$0xff] }
  0x16   :  { %v1002_v14 = vld [vmem:[%s1246_s24] sm:$0xff]  ;;  %v1009_v15 = vld [vmem:[%s1246_s24 + $0x8] sm:$0xff]  ;;  %260 = vmatpush.msra.mxu3 %v779_v42 }
  0x17   :  { %773 = vmatmul.msk.f32.gmra.mxu0 %vm73_vm0, %v67_v4  ;;  %v814_v3 = vld [vmem:[%s1223_s9] ss:$0 sm:$0xff] }
  0x18   :  { %261 = vmatpush.msra.mxu3 %v778_v45 }
  0x1a   :  { %490 = vmatpush.msrb.mxu3 %v474_v51 }
  0x1c   :  { %491 = vmatpush.msrb.mxu3 %v473_v52  ;;  %v790_v52 = vld [vmem:[%s1220_s6 + $0x48] sm:$0xff] }
  0x1e   :  { %492 = vmatpush.msrb.mxu3 %v472_v54  ;;  %v789_v54 = vld [vmem:[%s1220_s6 + $0x40] sm:$0xff] }
  0x20   :  { %493 = vmatpush.msrb.mxu3 %v471_v56 }
  0x8c   :  { %v97_v8 = vpop.f32.mrf.mxu0 }
  0x8d   :  { %v991_v9 = vadd.f32 %v811_v7, %v97_v8 }
  0x8f   :  { %774 = vmatmul.msk.f32.vlgmr.msra.gmra.mxu1 %vm112_vm1, %v991_v9 }
  0x94   :  { %v100_v10 = vpop.f32.mrf.mxu0 }
  0x95   :  { %v995_v11 = vadd.f32 %v811_v7, %v100_v10 }
  0x97   :  { %775 = vmatmul.msk.f32.gmra.mxu1 %vm112_vm1, %v995_v11 }
 0x10c   :  { %v136_v12 = vpop.f32.mrf.mxu1 }
 0x114   :  { %v139_v13 = vpop.f32.mrf.mxu1 }
 0x115   :  { %166 = vmatpush.msra.mxu2 %v139_v13 }
 0x117   :  { %167 = vmatpush.msra.mxu2 %v136_v12 }
 0x118   :  { %776 = vmatmul.msk.f32.vlgmr.msra.gmra.mxu2 %vm145_vm2, %v1002_v14 }
 0x120   :  { %777 = vmatmul.msk.f32.gmra.mxu2 %vm145_vm2, %v1009_v15 }
 0x19b   :  { %v169_v16 = vpop.f32.mrf.mxu2 }
 0x19c   :  { %v170_v18 = vadd.f32 %v812_v17, %v169_v16 }
 0x19e   :  { %v185_v20 = vmul.f32 %v170_v18, %v170_v18  ;;  %v175_v22 = vsel %vm112_vm1, %v170_v18, 0.0 }
 0x1a0   :  { %v187_v26 = vsel %vm112_vm1, %v185_v20, 0.0  ;;  %v469_v20 = vld [vmem:[%s1247_s29] sm:$0xff] }
 0x1a3   :  { %v172_v19 = vpop.f32.mrf.mxu2 }
 0x1a4   :  { %v173_v21 = vadd.f32 %v812_v17, %v172_v19 }
 0x1a6   :  { %v176_v23 = vsel %vm112_vm1, %v173_v21, 0.0  ;;  %v186_v24 = vmul.f32 %v173_v21, %v173_v21 }
 0x1a7   :  { %v177_v25 = vadd.f32 %v176_v23, %v175_v22  ;;  %v815_v23 = vld [vmem:[%s1221_s7 + $0x1] ss:$0 sm:$0xff] }
 0x1a8   :  { %v188_v27 = vsel %vm112_vm1, %v186_v24, 0.0 }
 0x1a9   :  { %v178_v28 = vrot.slane %v177_v25, 4  ;;  %v189_v29 = vadd.f32 %v188_v27, %v187_v26 }
 0x1ab   :  { %v179_v30 = vadd.f32 %v178_v28, %v177_v25  ;;  %v190_v31 = vrot.slane %v189_v29, 4 }
 0x1ad   :  { %v180_v32 = vrot.slane %v179_v30, 2  ;;  %v191_v33 = vadd.f32 %v190_v31, %v189_v29 }
 0x1af   :  { %v181_v34 = vadd.f32 %v180_v32, %v179_v30  ;;  %v192_v35 = vrot.slane %v191_v33, 2 }
 0x1b1   :  { %v182_v36 = vrot.slane %v181_v34, 1  ;;  %v193_v37 = vadd.f32 %v192_v35, %v191_v33 }
 0x1b3   :  { %v183_v40 = vadd.f32 %v182_v36, %v181_v34  ;;  %v194_v41 = vrot.slane %v193_v37, 1 }
 0x1b5   :  { %v184_v43 = vmul.f32 0.0625, %v183_v40  ;;  %v195_v44 = vadd.f32 %v194_v41, %v193_v37 }
 0x1b7   :  { %v196_v46 = vmul.f32 0.0625, %v195_v44  ;;  %v197_v47 = vmul.f32 %v184_v43, %v184_v43  ;;  %v200_v61 = vsub.f32 %v170_v18, %v184_v43  ;;  %v201_v62 = vsub.f32 %v173_v21, %v184_v43  ;;  %v470_v21 = vld [vmem:[%s1247_s29 + $0x8] sm:$0xff] }
 0x1b9   :  { %v198_v48 = vsub.f32 %v196_v46, %v197_v47  ;;  %v792_v46 = vld [vmem:[%s1220_s6 + $0x58] sm:$0xff] }
 0x1ba   :  { %378 = vmatpush.msrb.mxu2 %v792_v46 }
 0x1bb   :  { %v199_v49 = vmax.f32 %v198_v48, 0.0 }
 0x1bd   :  { %v202_v50 = vadd.f32 1e-05, %v199_v49  ;;  %v791_v49 = vld [vmem:[%s1220_s6 + $0x50] sm:$0xff] }
 0x1be   :  { %379 = vmatpush.msrb.mxu2 %v791_v49 }
 0x1bf   :  { %827 = vrsqrt.f32 %v202_v50  ;;  %vm209_vm4 = vweird.f32 %v202_v50 }
 0x1c0   :  { %380 = vmatpush.msrb.mxu2 %v790_v52 }
 0x1c2   :  { %381 = vmatpush.msrb.mxu2 %v789_v54 }
 0x1c5   :  { %v828_v53 = vpop.eup %827 }
 0x1c6   :  { %v204_v55 = vmul.f32 %v828_v53, %v202_v50  ;;  %vm210_vm3 = vweird.f32 %v828_v53 }
 0x1c7   :  { %vm211_vm5 = vmor %vm209_vm4, %vm210_vm3 }
 0x1c8   :  { %v205_v57 = vmul.f32 %v828_v53, %v204_v55 }
 0x1ca   :  { %v206_v58 = vmul.f32 0.5, %v205_v57 }
 0x1cc   :  { %v207_v59 = vsub.f32 1.5, %v206_v58 }
 0x1ce   :  { %v208_v60 = vmul.f32 %v828_v53, %v207_v59 }
 0x1d0   :  { %v212_v0 = vsel %vm211_vm5, %v828_v53, %v208_v60 }
 0x1d1   :  { %v213_v1 = vmul.f32 %v212_v0, %v200_v61  ;;  %v214_v2 = vmul.f32 %v212_v0, %v201_v62 }
 0x1d3   :  { %v218_v4 = vmul.f32 %v813_v63, %v213_v1  ;;  %v219_v6 = vmul.f32 %v813_v63, %v214_v2  ;;  %v816_v1 = vld [vmem:[%s1222_s8 + $0x1] ss:$0 sm:$0xff] }
 0x1d5   :  { %v223_v5 = vadd.f32 %v814_v3, %v218_v4  ;;  %v224_v10 = vadd.f32 %v814_v3, %v219_v6 }
 0x1d7   :  { %v225_v7 = vmax.f32 %v223_v5, 0.0  ;;  %v226_v12 = vmax.f32 %v224_v10, 0.0  ;;  %v819_v5 = vld [vmem:[%s1223_s9 + $0x1] ss:$0 sm:$0xff] }
 0x1d9   :  { %v1051_v8 = vadd.f32 %v225_v7, %v991_v9  ;;  %v1056_v13 = vadd.f32 %v226_v12, %v995_v11 }
 0x1db   :  { %785 = vmatmul.msk.f32.vlgmr.msra.gmra.mxu3 %vm112_vm1, %v1051_v8 }
 0x1e3   :  { %786 = vmatmul.msk.f32.gmra.mxu3 %vm112_vm1, %v1056_v13 }
 0x1eb   :  { %800 = vmatmul.msk.f32.vlgmr.msrb.gmra.mxu3 %vm112_vm1, %v991_v9 }
 0x1f3   :  { %801 = vmatmul.msk.f32.gmra.mxu3 %vm112_vm1, %v995_v11 }
 0x25e   :  { %v263_v16 = vpop.f32.mrf.mxu3 }
 0x266   :  { %v266_v17 = vpop.f32.mrf.mxu3 }
 0x267   :  { %286 = vmatpush.msrb.mxu0 %v266_v17 }
 0x269   :  { %287 = vmatpush.msrb.mxu0 %v263_v16 }
 0x26a   :  { %787 = vmatmul.msk.f32.vlgmr.msrb.gmra.mxu0 %vm145_vm2, %v1002_v14 }
 0x26e   :  { %v495_v18 = vpop.f32.mrf.mxu3 }
 0x272   :  { %788 = vmatmul.msk.f32.gmra.mxu0 %vm145_vm2, %v1009_v15 }
 0x276   :  { %v498_v19 = vpop.f32.mrf.mxu3 }
 0x277   :  { %524 = vmatpush.msra.mxu0 %v498_v19 }
 0x279   :  { %525 = vmatpush.msra.mxu0 %v495_v18 }
 0x27a   :  { %802 = vmatmul.msk.f32.vlgmr.msra.gmra.mxu0 %vm145_vm2, %v469_v20 }
 0x282   :  { %803 = vmatmul.msk.f32.gmra.mxu0 %vm145_vm2, %v470_v21  ;;  %v817_v21 = vld [vmem:[%s1225_s11] ss:$0 sm:$0xff]  ;;  %s861_s11 = smov [#allocation2]  }
 0x283   :  { %s761_s29 = sshll.u32 %s861_s11, 4  ;;  %s762_s29 = int_to_ptr.vmem [resolvable:$true] %s761_s29 }
 0x2e7   :  { %v289_v22 = vpop.f32.mrf.mxu0 }
 0x2e8   :  { %v290_v24 = vadd.f32 %v815_v23, %v289_v22 }
 0x2ea   :  { %v305_v26 = vmul.f32 %v290_v24, %v290_v24  ;;  %v295_v28 = vsel %vm112_vm1, %v290_v24, 0.0 }
 0x2ec   :  { %v307_v32 = vsel %vm112_vm1, %v305_v26, 0.0 }
 0x2ef   :  { %v292_v25 = vpop.f32.mrf.mxu0 }
 0x2f0   :  { %v293_v27 = vadd.f32 %v815_v23, %v292_v25 }
 0x2f2   :  { %v296_v29 = vsel %vm112_vm1, %v293_v27, 0.0  ;;  %v306_v30 = vmul.f32 %v293_v27, %v293_v27 }
 0x2f3   :  { %v297_v31 = vadd.f32 %v296_v29, %v295_v28 }
 0x2f4   :  { %v308_v33 = vsel %vm112_vm1, %v306_v30, 0.0 }
 0x2f5   :  { %v298_v34 = vrot.slane %v297_v31, 4  ;;  %v309_v35 = vadd.f32 %v308_v33, %v307_v32 }
 0x2f7   :  { %v299_v36 = vadd.f32 %v298_v34, %v297_v31  ;;  %v310_v37 = vrot.slane %v309_v35, 4  ;;  %v527_v20 = vpop.f32.mrf.mxu0 }
 0x2f8   :  { %v528_v23 = vadd.f32 %v817_v21, %v527_v20 }
 0x2f9   :  { %v300_v38 = vrot.slane %v299_v36, 2  ;;  %v311_v39 = vadd.f32 %v310_v37, %v309_v35 }
 0x2fa   :  { %v543_v25 = vmul.f32 %v528_v23, %v528_v23 }
 0x2fb   :  { %v301_v40 = vadd.f32 %v300_v38, %v299_v36  ;;  %v312_v41 = vrot.slane %v311_v39, 2 }
 0x2fd   :  { %v302_v42 = vrot.slane %v301_v40, 1  ;;  %v313_v43 = vadd.f32 %v312_v41, %v311_v39 }
 0x2ff   :  { %v303_v44 = vadd.f32 %v302_v42, %v301_v40  ;;  %v314_v45 = vrot.slane %v313_v43, 1  ;;  %v530_v22 = vpop.f32.mrf.mxu0 }
 0x301   :  { %v304_v47 = vmul.f32 0.0625, %v303_v44  ;;  %v315_v48 = vadd.f32 %v314_v45, %v313_v43 }
 0x303   :  { %v316_v50 = vmul.f32 0.0625, %v315_v48  ;;  %v317_v51 = vmul.f32 %v304_v47, %v304_v47  ;;  %v320_v63 = vsub.f32 %v290_v24, %v304_v47  ;;  %v321_v0 = vsub.f32 %v293_v27, %v304_v47 }
 0x304   :  { %v533_v24 = vsel %vm112_vm1, %v528_v23, 0.0 }
 0x305   :  { %v318_v53 = vsub.f32 %v316_v50, %v317_v51 }
 0x307   :  { %v319_v55 = vmax.f32 %v318_v53, 0.0 }
 0x309   :  { %v322_v56 = vadd.f32 1e-05, %v319_v55 }
 0x30b   :  { %829 = vrsqrt.f32 %v322_v56  ;;  %vm329_vm7 = vweird.f32 %v322_v56 }
 0x311   :  { %v830_v57 = vpop.eup %829 }
 0x312   :  { %v324_v58 = vmul.f32 %v830_v57, %v322_v56  ;;  %vm330_vm6 = vweird.f32 %v830_v57 }
 0x313   :  { %vm331_vm8 = vmor %vm329_vm7, %vm330_vm6 }
 0x314   :  { %v325_v59 = vmul.f32 %v830_v57, %v324_v58 }
 0x316   :  { %v326_v60 = vmul.f32 0.5, %v325_v59  ;;  %v818_v59 = vld [vmem:[%s1226_s12] ss:$0 sm:$0xff] }
 0x318   :  { %v327_v61 = vsub.f32 1.5, %v326_v60 }
 0x31a   :  { %v328_v62 = vmul.f32 %v830_v57, %v327_v61 }
 0x31c   :  { %v332_v2 = vsel %vm331_vm8, %v830_v57, %v328_v62  ;;  %v820_v62 = vld [vmem:[%s1227_s13] ss:$0 sm:$0xff] }
 0x31d   :  { %v333_v3 = vmul.f32 %v332_v2, %v320_v63  ;;  %v334_v4 = vmul.f32 %v332_v2, %v321_v0 }
 0x31f   :  { %v338_v6 = vmul.f32 %v816_v1, %v333_v3  ;;  %v339_v10 = vmul.f32 %v816_v1, %v334_v4 }
 0x321   :  { %v343_v7 = vadd.f32 %v819_v5, %v338_v6  ;;  %v344_v17 = vadd.f32 %v819_v5, %v339_v10 }
 0x323   :  { %v345_v12 = vmax.f32 %v343_v7, 0.0  ;;  %v346_v18 = vmax.f32 %v344_v17, 0.0 }
 0x325   :  { %v1102_v16 = vadd.f32 %v345_v12, %v1051_v8  ;;  %v1107_v19 = vadd.f32 %v346_v18, %v1056_v13  ;;  %v531_v8 = vadd.f32 %v817_v21, %v530_v22  ;;  %v545_v13 = vsel %vm112_vm1, %v543_v25, 0.0  ;;  %v821_v12 = vld [vmem:[%s1221_s7 + $0x2] ss:$0 sm:$0xff] }
 0x327   :  { %796 = vmatmul.msk.f32.vlgmr.msrb.gmra.mxu2 %vm112_vm1, %v1102_v16  ;;  %v534_v26 = vsel %vm112_vm1, %v531_v8, 0.0  ;;  %v544_v27 = vmul.f32 %v531_v8, %v531_v8 }
 0x328   :  { %v535_v28 = vadd.f32 %v534_v26, %v533_v24 }
 0x329   :  { %v546_v29 = vsel %vm112_vm1, %v544_v27, 0.0 }
 0x32a   :  { %v536_v30 = vrot.slane %v535_v28, 4  ;;  %v547_v31 = vadd.f32 %v546_v29, %v545_v13 }
 0x32c   :  { %v537_v32 = vadd.f32 %v536_v30, %v535_v28  ;;  %v548_v33 = vrot.slane %v547_v31, 4 }
 0x32e   :  { %v538_v34 = vrot.slane %v537_v32, 2  ;;  %v549_v35 = vadd.f32 %v548_v33, %v547_v31 }
 0x32f   :  { %797 = vmatmul.msk.f32.gmra.mxu2 %vm112_vm1, %v1107_v19 }
 0x330   :  { %v539_v36 = vadd.f32 %v538_v34, %v537_v32  ;;  %v550_v37 = vrot.slane %v549_v35, 2 }
 0x332   :  { %v540_v38 = vrot.slane %v539_v36, 1  ;;  %v551_v39 = vadd.f32 %v550_v37, %v549_v35 }
 0x334   :  { %v541_v40 = vadd.f32 %v540_v38, %v539_v36  ;;  %v552_v41 = vrot.slane %v551_v39, 1 }
 0x336   :  { %v542_v42 = vmul.f32 0.0625, %v541_v40  ;;  %v553_v43 = vadd.f32 %v552_v41, %v551_v39  ;;  %v587_v41 = vld [vmem:[%s1248_s1] sm:$0x3] }
 0x338   :  { %v554_v44 = vmul.f32 0.0625, %v553_v43  ;;  %v555_v45 = vmul.f32 %v542_v42, %v542_v42  ;;  %v559_v55 = vsub.f32 %v531_v8, %v542_v42  ;;  %v558_v57 = vsub.f32 %v528_v23, %v542_v42  ;;  %v638_v42 = vld [vmem:[%s1228_s14 + $0x38] sm:$0xff]  ;;  %v637_v43 = vld [vmem:[%s1228_s14 + $0x30] sm:$0xff] }
 0x339   :  { %654 = vmatpush.msra.mxu3 %v638_v42 }
 0x33a   :  { %v556_v46 = vsub.f32 %v554_v44, %v555_v45  ;;  %v636_v44 = vld [vmem:[%s1228_s14 + $0x28] sm:$0xff]  ;;  %v635_v45 = vld [vmem:[%s1228_s14 + $0x20] sm:$0xff] }
 0x33b   :  { %655 = vmatpush.msra.mxu3 %v637_v43 }
 0x33c   :  { %v557_v47 = vmax.f32 %v556_v46, 0.0 }
 0x33d   :  { %656 = vmatpush.msra.mxu3 %v636_v44 }
 0x33e   :  { %v560_v48 = vadd.f32 1e-05, %v557_v47 }
 0x33f   :  { %657 = vmatpush.msra.mxu3 %v635_v45 }
 0x340   :  { %831 = vrsqrt.f32 %v560_v48  ;;  %vm567_vm9 = vweird.f32 %v560_v48 }
 0x346   :  { %v832_v49 = vpop.eup %831 }
 0x347   :  { %v562_v50 = vmul.f32 %v832_v49, %v560_v48  ;;  %vm568_vm10 = vweird.f32 %v832_v49 }
 0x348   :  { %vm569_vm11 = vmor %vm567_vm9, %vm568_vm10 }
 0x349   :  { %v563_v51 = vmul.f32 %v832_v49, %v562_v50 }
 0x34b   :  { %v564_v52 = vmul.f32 0.5, %v563_v51 }
 0x34d   :  { %v565_v53 = vsub.f32 1.5, %v564_v52 }
 0x34f   :  { %v566_v54 = vmul.f32 %v832_v49, %v565_v53 }
 0x351   :  { %v570_v56 = vsel %vm569_vm11, %v832_v49, %v566_v54  ;;  %v822_v54 = vld [vmem:[%s1222_s8 + $0x2] ss:$0 sm:$0xff] }
 0x352   :  { %v572_v58 = vmul.f32 %v570_v56, %v559_v55  ;;  %v571_v60 = vmul.f32 %v570_v56, %v558_v57 }
 0x354   :  { %v577_v61 = vmul.f32 %v818_v59, %v572_v58  ;;  %v576_v0 = vmul.f32 %v818_v59, %v571_v60  ;;  %v823_v58 = vld [vmem:[%s1223_s9 + $0x2] ss:$0 sm:$0xff] }
 0x356   :  { %v582_v1 = vadd.f32 %v820_v62, %v577_v61  ;;  %v581_v2 = vadd.f32 %v820_v62, %v576_v0 }
 0x358   :  { %v584_v3 = vmax.f32 %v582_v1, 0.0  ;;  %v583_v5 = vmax.f32 %v581_v2, 0.0 }
 0x35a   :  { %v586_v6 = vadd.f32 %v584_v3, %v995_v11  ;;  %v585_v7 = vadd.f32 %v583_v5, %v991_v9  ;;  %v634_v3 = vld [vmem:[%s1228_s14 + $0x18] sm:$0xff]  ;;  %v632_v5 = vld [vmem:[%s1228_s14 + $0x8] sm:$0xff] }
 0x3aa   :  { %v383_v63 = vpop.f32.mrf.mxu2 }
 0x3b2   :  { %v386_v4 = vpop.f32.mrf.mxu2 }
 0x3b3   :  { %406 = vmatpush.msrb.mxu1 %v386_v4  ;;  %v633_v4 = vld [vmem:[%s1228_s14 + $0x10] sm:$0xff] }
 0x3b5   :  { %407 = vmatpush.msrb.mxu1 %v383_v63 }
 0x3b6   :  { %798 = vmatmul.msk.f32.vlgmr.msrb.gmra.mxu1 %vm145_vm2, %v1002_v14 }
 0x3b7   :  { %625 = vmatpush.msra.mxu1 %v586_v6  ;;  %v694_v6 = vld [vmem:[%s1230_s16 + $0x18] sm:$0xff] }
 0x3b9   :  { %626 = vmatpush.msra.mxu1 %v585_v7 }
 0x3bb   :  { %714 = vmatpush.msrb.mxu1 %v694_v6 }
 0x3be   :  { %799 = vmatmul.msk.f32.gmra.mxu1 %vm145_vm2, %v1009_v15 }
 0x3c6   :  { %805 = vmatmul.msk.f32.vlgmr.msra.gmra.mxu1 %vm145_vm2, %v587_v41 }
 0x433   :  { %v409_v10 = vpop.f32.mrf.mxu1 }
 0x434   :  { %v410_v17 = vadd.f32 %v821_v12, %v409_v10  ;;  %v693_v10 = vld [vmem:[%s1230_s16 + $0x10] sm:$0xff] }
 0x435   :  { %715 = vmatpush.msrb.mxu1 %v693_v10 }
 0x436   :  { %v425_v20 = vmul.f32 %v410_v17, %v410_v17  ;;  %v415_v11 = vsel %vm112_vm1, %v410_v17, 0.0 }
 0x438   :  { %v427_v9 = vsel %vm112_vm1, %v425_v20, 0.0  ;;  %v725_v20 = vld [vmem:[%s1232_s18 + $0x10] sm:$0xff] }
 0x43b   :  { %v412_v18 = vpop.f32.mrf.mxu1 }
 0x43c   :  { %v413_v21 = vadd.f32 %v821_v12, %v412_v18  ;;  %v692_v12 = vld [vmem:[%s1230_s16 + $0x8] sm:$0xff]  ;;  %v726_v18 = vld [vmem:[%s1232_s18 + $0x18] sm:$0xff] }
 0x43d   :  { %716 = vmatpush.msrb.mxu1 %v692_v12  ;;  %746 = vmatpush.msrb.mxu3 %v726_v18 }
 0x43e   :  { %v416_v14 = vsel %vm112_vm1, %v413_v21, 0.0  ;;  %v426_v22 = vmul.f32 %v413_v21, %v413_v21 }
 0x43f   :  { %v417_v23 = vadd.f32 %v416_v14, %v415_v11  ;;  %747 = vmatpush.msrb.mxu3 %v725_v20  ;;  %v824_v11 = vld [vmem:[%s1249_s26] ss:$0 sm:$0xff] }
 0x440   :  { %v428_v8 = vsel %vm112_vm1, %v426_v22, 0.0 }
 0x441   :  { %v418_v15 = vrot.slane %v417_v23, 4  ;;  %v429_v24 = vadd.f32 %v428_v8, %v427_v9  ;;  %v724_v8 = vld [vmem:[%s1232_s18 + $0x8] sm:$0xff] }
 0x442   :  { %748 = vmatpush.msrb.mxu3 %v724_v8 }
 0x443   :  { %v419_v25 = vadd.f32 %v418_v15, %v417_v23  ;;  %v430_v26 = vrot.slane %v429_v24, 4  ;;  %v723_v15 = vld [vmem:[%s1232_s18] sm:$0xff]  ;;  %s763_s18 = sshll.u32 %s1234_s20, 4  ;;  %s764_s18 = int_to_ptr.hbm [resolvable:$true] %s763_s18 }
 0x444   :  { %749 = vmatpush.msrb.mxu3 %v723_v15 }
 0x445   :  { %v420_v27 = vrot.slane %v419_v25, 2  ;;  %v431_v28 = vadd.f32 %v430_v26, %v429_v24  ;;  %v825_v24 = vld [vmem:[%s1231_s17] ss:$0 sm:$0xff] }
 0x447   :  { %v421_v13 = vadd.f32 %v420_v27, %v419_v25  ;;  %v432_v29 = vrot.slane %v431_v28, 2 }
 0x449   :  { %v422_v30 = vrot.slane %v421_v13, 1  ;;  %v433_v31 = vadd.f32 %v432_v29, %v431_v28  ;;  %v826_v28 = vld [vmem:[%s1233_s19] ss:$0 sm:$0xff] }
 0x44b   :  { %v423_v32 = vadd.f32 %v422_v30, %v421_v13  ;;  %v434_v33 = vrot.slane %v433_v31, 1 }
 0x44d   :  { %v424_v34 = vmul.f32 0.0625, %v423_v32  ;;  %v435_v35 = vadd.f32 %v434_v33, %v433_v31 }
 0x44f   :  { %v436_v36 = vmul.f32 0.0625, %v435_v35  ;;  %v437_v37 = vmul.f32 %v424_v34, %v424_v34  ;;  %v440_v52 = vsub.f32 %v410_v17, %v424_v34  ;;  %v441_v53 = vsub.f32 %v413_v21, %v424_v34  ;;  %v691_v17 = vld [vmem:[%s1230_s16] sm:$0xff] }
 0x450   :  { %717 = vmatpush.msrb.mxu1 %v691_v17 }
 0x451   :  { %v438_v38 = vsub.f32 %v436_v36, %v437_v37 }
 0x453   :  { %v439_v39 = vmax.f32 %v438_v38, 0.0 }
 0x455   :  { %v442_v40 = vadd.f32 1e-05, %v439_v39 }
 0x457   :  { %833 = vrsqrt.f32 %v442_v40  ;;  %vm449_vm13 = vweird.f32 %v442_v40 }
 0x45d   :  { %v834_v46 = vpop.eup %833 }
 0x45e   :  { %v444_v47 = vmul.f32 %v834_v46, %v442_v40  ;;  %vm450_vm12 = vweird.f32 %v834_v46 }
 0x45f   :  { %vm451_vm14 = vmor %vm449_vm13, %vm450_vm12 }
 0x460   :  { %v445_v48 = vmul.f32 %v834_v46, %v444_v47 }
 0x462   :  { %v446_v49 = vmul.f32 0.5, %v445_v48 }
 0x464   :  { %v447_v50 = vsub.f32 1.5, %v446_v49 }
 0x466   :  { %v448_v51 = vmul.f32 %v834_v46, %v447_v50 }
 0x468   :  { %v452_v55 = vsel %vm451_vm14, %v834_v46, %v448_v51 }
 0x469   :  { %v453_v56 = vmul.f32 %v452_v55, %v440_v52  ;;  %v454_v57 = vmul.f32 %v452_v55, %v441_v53 }
 0x46b   :  { %v459_v59 = vmul.f32 %v822_v54, %v454_v57  ;;  %v458_v60 = vmul.f32 %v822_v54, %v453_v56 }
 0x46d   :  { %v464_v61 = vadd.f32 %v823_v58, %v459_v59  ;;  %v463_v62 = vadd.f32 %v823_v58, %v458_v60 }
 0x46f   :  { %v466_v63 = vmax.f32 %v464_v61, 0.0  ;;  %v465_v0 = vmax.f32 %v463_v62, 0.0 }
 0x471   :  { %v468_v1 = vadd.f32 %v466_v63, %v1107_v19  ;;  %v467_v2 = vadd.f32 %v465_v0, %v1102_v16  ;;  %v631_v16 = vld [vmem:[%s1228_s14] sm:$0xff]  ;;  %v628_v19 = vpop.f32.mrf.mxu1 }
 0x472   :  { %806 = vmatmul.msk.f32.vlgmr.msra.gmra.mxu3 %vm112_vm1, %v628_v19 }
 0x473   :  { %605 = vmatpush.msra.mxu2 %v468_v1 }
 0x475   :  { %606 = vmatpush.msra.mxu2 %v467_v2 }
 0x476   :  { %804 = vmatmul.msk.f32.vlgmr.msra.gmra.mxu2 %vm145_vm2, %v587_v41 }
 0x477   :  { %677 = vmatpush.msrb.mxu2 %v634_v3 }
 0x479   :  { %678 = vmatpush.msrb.mxu2 %v633_v4 }
 0x47b   :  { %679 = vmatpush.msrb.mxu2 %v632_v5 }
 0x47d   :  { %680 = vmatpush.msrb.mxu2 %v631_v16 }
 0x4f5   :  { %v659_v21 = vpop.f32.mrf.mxu3 }
 0x4f9   :  { %v608_v7 = vpop.f32.mrf.mxu2 }
 0x4fa   :  { %807 = vmatmul.msk.f32.vlgmr.msrb.gmra.mxu2 %vm112_vm1, %v608_v7 }
 0x57d   :  { %v682_v14 = vpop.f32.mrf.mxu2 }
 0x57e   :  { %v683_v22 = vadd.f32 %v682_v14, %v659_v21 }
 0x580   :  { %v689_v23 = vadd.f32 %v824_v11, %v683_v22 }
 0x582   :  { %v690_v9 = vmax.f32 %v689_v23, 0.0 }
 0x584   :  { %808 = vmatmul.msk.f32.vlgmr.msrb.gmra.mxu1 %vm112_vm1, %v690_v9 }
 0x601   :  { %v719_v25 = vpop.f32.mrf.mxu1 }
 0x602   :  { %v720_v26 = vadd.f32 %v825_v24, %v719_v25 }
 0x604   :  { %v722_v27 = vmax.f32 %v720_v26, 0.0 }
 0x606   :  { %809 = vmatmul.msk.f32.vlgmr.msrb.gmra.mxu3 %vm112_vm1, %v722_v27 }
 0x689   :  { %v751_v13 = vpop.f32.mrf.mxu3 }
 0x68a   :  { %v752_v29 = vadd.f32 %v826_v28, %v751_v13 }
 0x68c   :  { %755 = vst.msk [vmem:[#allocation2] sm:$0x3] %vm754_vm15, %v752_v29 }
 0x68d   :  { %766 = dma.vmem_to_hbm [thread:$0]  %s762_s29, 32, %s764_s18, [#allocation3]  }
 0x68e   :  { %859 = dma.done.wait [#allocation3], 32  }
 0x68f   :  { %860 = vsyncadd [#allocation3], 4294967264 }
 0x690   :  { %771 = vsyncpa [#allocation3], 1 }

</bundles_post_ra>
